<compile_context>
chip_gen: v7x
topology: tpu7x:2x2x1
jax: 0.10.0
libtpu: 0.0.40
codegen_flags: <defaults>
</compile_context>

<pallas_src>
import jax
import jax.numpy as jnp
from jax.experimental import pallas as pl
from jax.experimental.pallas import tpu as pltpu


def _mlp_kernel(xT_ref, w1_ref, b1_ref, w2_ref, b2_ref, w3_ref, b3_ref, o_ref):
    # xT: [in_dim, TB] bf16, weights in torch layout [out_f, in_f] (bf16),
    # biases [out_f, 1] f32.  All math: y^T = W @ x^T + b, f32 accumulation.
    xT = xT_ref[...]                                             # bf16 [in, TB]

    h1 = jnp.dot(w1_ref[...], xT,
                 preferred_element_type=jnp.float32) + b1_ref[...]   # [8, TB] f32
    h1 = jnp.maximum(h1, 0.0)

    h2 = jnp.dot(w2_ref[...].astype(jnp.float32), h1,
                 preferred_element_type=jnp.float32) + b2_ref[...]   # [4, TB] f32
    h2 = jnp.maximum(h2, 0.0)

    out = jnp.dot(w3_ref[...].astype(jnp.float32), h2,
                  preferred_element_type=jnp.float32) + b3_ref[...]  # [out, TB] f32
    o_ref[...] = out.astype(o_ref.dtype)


def smash_bot_forward(x, params, *, batch_tile=1024):
    """x: [B, input_dim] float32.  params: torch-layout weights/biases.

    Returns [B, output_dim] float32.
    """
    assert batch_tile % 128 == 0, "batch_tile must be a multiple of 128 (lane width)"

    B, in_dim = x.shape

    # Weights in torch layout [out_features, in_features]; cast to bf16 to
    # halve HBM traffic (accumulation stays f32 inside the kernel).
    w1 = params["w1"].astype(jnp.bfloat16)            # [8, in_dim]
    w2 = params["w2"].astype(jnp.bfloat16)            # [4, 8]
    w3 = params["w3"].astype(jnp.bfloat16)            # [out_dim, 4]
    b1 = params["b1"].reshape(-1, 1).astype(jnp.float32)  # [8, 1]
    b2 = params["b2"].reshape(-1, 1).astype(jnp.float32)  # [4, 1]
    b3 = params["b3"].reshape(-1, 1).astype(jnp.float32)  # [out_dim, 1]
    out_dim = w3.shape[0]

    # Transpose so batch rides the lane axis; pad ragged batch to the tile.
    pad = (-B) % batch_tile
    b_padded = B + pad
    xT = jnp.transpose(x).astype(jnp.bfloat16)        # [in_dim, B]
    if pad:
        xT = jnp.pad(xT, ((0, 0), (0, pad)))          # [in_dim, B_padded]

    grid = (b_padded // batch_tile,)

    in_specs = [
        pl.BlockSpec((in_dim, batch_tile), lambda i: (0, i)),   # x^T batch tile
        pl.BlockSpec(w1.shape, lambda i: (0, 0)),               # w1 (resident)
        pl.BlockSpec(b1.shape, lambda i: (0, 0)),               # b1 (resident)
        pl.BlockSpec(w2.shape, lambda i: (0, 0)),               # w2 (resident)
        pl.BlockSpec(b2.shape, lambda i: (0, 0)),               # b2 (resident)
        pl.BlockSpec(w3.shape, lambda i: (0, 0)),               # w3 (resident)
        pl.BlockSpec(b3.shape, lambda i: (0, 0)),               # b3 (resident)
    ]
    out_spec = pl.BlockSpec((out_dim, batch_tile), lambda i: (0, i))

    outT = pl.pallas_call(
        _mlp_kernel,
        out_shape=jax.ShapeDtypeStruct((out_dim, b_padded), jnp.float32),
        grid_spec=pl.GridSpec(
            grid=grid,
            in_specs=in_specs,
            out_specs=out_spec,
        ),
        compiler_params=pltpu.CompilerParams(
            dimension_semantics=("parallel",),
        ),
    )(xT, w1, b1, w2, b2, w3, b3)

    # Back to [B, out_dim] (drop batch padding).
    return jnp.transpose(outT[:, :B])


def init_params(key, input_dim, output_dim):
    """Deterministic synthetic init, torch-layout shapes ([out_f, in_f])."""
    k1, k2, k3, k4, k5, k6 = jax.random.split(key, 6)
    w1 = jax.random.normal(k1, (8, input_dim), jnp.float32) * 0.1
    b1 = jax.random.normal(k2, (8,), jnp.float32) * 0.1
    w2 = jax.random.normal(k3, (4, 8), jnp.float32) * 0.1
    b2 = jax.random.normal(k4, (4,), jnp.float32) * 0.1
    w3 = jax.random.normal(k5, (output_dim, 4), jnp.float32) * 0.1
    b3 = jax.random.normal(k6, (output_dim,), jnp.float32) * 0.1
    return dict(w1=w1, b1=b1, w2=w2, b2=b2, w3=w3, b3=b3)


def reference_forward(x, p):
    """Pure-JAX reference using the same bf16-cast inputs as the kernel."""
    xb = x.astype(jnp.bfloat16).astype(jnp.float32)
    w1 = p["w1"].astype(jnp.bfloat16).astype(jnp.float32)
    w2 = p["w2"].astype(jnp.bfloat16).astype(jnp.float32)
    w3 = p["w3"].astype(jnp.bfloat16).astype(jnp.float32)
    h1 = jnp.maximum(xb @ w1.T + p["b1"], 0.0)
    h2 = jnp.maximum(h1 @ w2.T + p["b2"], 0.0)
    return h2 @ w3.T + p["b3"]


if __name__ == "__main__":
    input_dim, output_dim = 32, 8
    batch = 384        # not a multiple of the tile -> exercises padding path
    batch_tile = 256   # padded batch 512 -> 2 parallel grid steps (v7x megacore)

    key = jax.random.PRNGKey(0)
    kx, kp = jax.random.split(key)
    x = jax.random.normal(kx, (batch, input_dim), jnp.float32)
    params = init_params(kp, input_dim, output_dim)

    out = smash_bot_forward(x, params, batch_tile=batch_tile)
    out = jax.block_until_ready(out)

    ref = reference_forward(x, params)
    assert out.shape == (batch, output_dim)
    max_err = float(jnp.max(jnp.abs(out - ref)))
    assert jnp.allclose(out, ref, atol=1e-3, rtol=1e-3), f"mismatch vs reference (max err {max_err})"

    print("KERNEL_OK")
</pallas_src>

<mosaic_0001>
module attributes {stable_mosaic.version = 11 : i64} {
  func.func @_mlp_kernel(%arg0: i32, %arg1: memref<32x256xbf16, #tpu.memory_space<vmem>>, %arg2: memref<8x32xbf16, #tpu.memory_space<vmem>>, %arg3: memref<8x1xf32, #tpu.memory_space<vmem>>, %arg4: memref<4x8xbf16, #tpu.memory_space<vmem>>, %arg5: memref<4x1xf32, #tpu.memory_space<vmem>>, %arg6: memref<8x4xbf16, #tpu.memory_space<vmem>>, %arg7: memref<8x1xf32, #tpu.memory_space<vmem>>, %arg8: memref<8x256xf32, #tpu.memory_space<vmem>>) attributes {dimension_semantics = [#tpu.dimension_semantics<parallel>], iteration_bounds = array<i64: 2>, scalar_prefetch = 0 : i64, scratch_operands = 0 : i64, tpu.core_type = #tpu.core_type<tc>, window_params = [{transform_indices = @transform_0, window_bounds = array<i64: 32, 256>}, {pipeline_mode = #tpu.pipeline_mode<synchronous>, transform_indices = @transform_1, window_bounds = array<i64: 8, 32>}, {pipeline_mode = #tpu.pipeline_mode<synchronous>, transform_indices = @transform_2, window_bounds = array<i64: 8, 1>}, {pipeline_mode = #tpu.pipeline_mode<synchronous>, transform_indices = @transform_3, window_bounds = array<i64: 4, 8>}, {pipeline_mode = #tpu.pipeline_mode<synchronous>, transform_indices = @transform_4, window_bounds = array<i64: 4, 1>}, {pipeline_mode = #tpu.pipeline_mode<synchronous>, transform_indices = @transform_5, window_bounds = array<i64: 8, 4>}, {pipeline_mode = #tpu.pipeline_mode<synchronous>, transform_indices = @transform_6, window_bounds = array<i64: 8, 1>}, {transform_indices = @transform_7, window_bounds = array<i64: 8, 256>}]} {
    %c0 = arith.constant 0 : index
    %c0_0 = arith.constant 0 : index
    %0 = vector.load %arg1[%c0, %c0_0] : memref<32x256xbf16, #tpu.memory_space<vmem>>, vector<32x256xbf16>
    %c0_1 = arith.constant 0 : index
    %c0_2 = arith.constant 0 : index
    %1 = vector.load %arg2[%c0_1, %c0_2] : memref<8x32xbf16, #tpu.memory_space<vmem>>, vector<8x32xbf16>
    %cst = arith.constant dense<0.000000e+00> : vector<8x256xf32>
    %2 = tpu.matmul %1, %0, %cst {dimension_numbers = #tpu.dot_dimension_numbers<[1], [0], [0], [1], [0, 0, 1, 1], [], []>} : vector<8x32xbf16>, vector<32x256xbf16>, vector<8x256xf32> -> vector<8x256xf32>
    %c0_3 = arith.constant 0 : index
    %c0_4 = arith.constant 0 : index
    %3 = vector.load %arg3[%c0_3, %c0_4] : memref<8x1xf32, #tpu.memory_space<vmem>>, vector<8x1xf32>
    %4 = vector.broadcast %3 : vector<8x1xf32> to vector<8x256xf32>
    %5 = arith.addf %2, %4 : vector<8x256xf32>
    %cst_5 = arith.constant 0.000000e+00 : f32
    %6 = vector.broadcast %cst_5 : f32 to vector<8x256xf32>
    %7 = arith.maximumf %5, %6 : vector<8x256xf32>
    %c0_6 = arith.constant 0 : index
    %c0_7 = arith.constant 0 : index
    %8 = vector.load %arg4[%c0_6, %c0_7] : memref<4x8xbf16, #tpu.memory_space<vmem>>, vector<4x8xbf16>
    %9 = arith.extf %8 : vector<4x8xbf16> to vector<4x8xf32>
    %cst_8 = arith.constant dense<0.000000e+00> : vector<4x256xf32>
    %10 = tpu.matmul %9, %7, %cst_8 {dimension_numbers = #tpu.dot_dimension_numbers<[1], [0], [0], [1], [0, 0, 1, 1], [], []>} : vector<4x8xf32>, vector<8x256xf32>, vector<4x256xf32> -> vector<4x256xf32>
    %c0_9 = arith.constant 0 : index
    %c0_10 = arith.constant 0 : index
    %11 = vector.load %arg5[%c0_9, %c0_10] : memref<4x1xf32, #tpu.memory_space<vmem>>, vector<4x1xf32>
    %12 = vector.broadcast %11 : vector<4x1xf32> to vector<4x256xf32>
    %13 = arith.addf %10, %12 : vector<4x256xf32>
    %cst_11 = arith.constant 0.000000e+00 : f32
    %14 = vector.broadcast %cst_11 : f32 to vector<4x256xf32>
    %15 = arith.maximumf %13, %14 : vector<4x256xf32>
    %c0_12 = arith.constant 0 : index
    %c0_13 = arith.constant 0 : index
    %16 = vector.load %arg6[%c0_12, %c0_13] : memref<8x4xbf16, #tpu.memory_space<vmem>>, vector<8x4xbf16>
    %17 = arith.extf %16 : vector<8x4xbf16> to vector<8x4xf32>
    %cst_14 = arith.constant dense<0.000000e+00> : vector<8x256xf32>
    %18 = tpu.matmul %17, %15, %cst_14 {dimension_numbers = #tpu.dot_dimension_numbers<[1], [0], [0], [1], [0, 0, 1, 1], [], []>} : vector<8x4xf32>, vector<4x256xf32>, vector<8x256xf32> -> vector<8x256xf32>
    %c0_15 = arith.constant 0 : index
    %c0_16 = arith.constant 0 : index
    %19 = vector.load %arg7[%c0_15, %c0_16] : memref<8x1xf32, #tpu.memory_space<vmem>>, vector<8x1xf32>
    %20 = vector.broadcast %19 : vector<8x1xf32> to vector<8x256xf32>
    %21 = arith.addf %18, %20 : vector<8x256xf32>
    %c0_17 = arith.constant 0 : index
    %c0_18 = arith.constant 0 : index
    %22 = vector.load %arg8[%c0_17, %c0_18] : memref<8x256xf32, #tpu.memory_space<vmem>>, vector<8x256xf32>
    tpu.vector_store %arg8[%c0_17, %c0_18], %21 {strides = array<i32>} : memref<8x256xf32, #tpu.memory_space<vmem>>, vector<8x256xf32>,
    return
  }
  func.func @transform_0(%arg0: i32) -> (i32, i32) {
    %c0_i32 = arith.constant 0 : i32
    %c0_i32_0 = arith.constant 0 : i32
    return %c0_i32, %arg0 : i32, i32
  }
  func.func @transform_1(%arg0: i32) -> (i32, i32) {
    %c0_i32 = arith.constant 0 : i32
    %c0_i32_0 = arith.constant 0 : i32
    %c0_i32_1 = arith.constant 0 : i32
    return %c0_i32, %c0_i32_0 : i32, i32
  }
  func.func @transform_2(%arg0: i32) -> (i32, i32) {
    %c0_i32 = arith.constant 0 : i32
    %c0_i32_0 = arith.constant 0 : i32
    %c0_i32_1 = arith.constant 0 : i32
    return %c0_i32, %c0_i32_0 : i32, i32
  }
  func.func @transform_3(%arg0: i32) -> (i32, i32) {
    %c0_i32 = arith.constant 0 : i32
    %c0_i32_0 = arith.constant 0 : i32
    %c0_i32_1 = arith.constant 0 : i32
    return %c0_i32, %c0_i32_0 : i32, i32
  }
  func.func @transform_4(%arg0: i32) -> (i32, i32) {
    %c0_i32 = arith.constant 0 : i32
    %c0_i32_0 = arith.constant 0 : i32
    %c0_i32_1 = arith.constant 0 : i32
    return %c0_i32, %c0_i32_0 : i32, i32
  }
  func.func @transform_5(%arg0: i32) -> (i32, i32) {
    %c0_i32 = arith.constant 0 : i32
    %c0_i32_0 = arith.constant 0 : i32
    %c0_i32_1 = arith.constant 0 : i32
    return %c0_i32, %c0_i32_0 : i32, i32
  }
  func.func @transform_6(%arg0: i32) -> (i32, i32) {
    %c0_i32 = arith.constant 0 : i32
    %c0_i32_0 = arith.constant 0 : i32
    %c0_i32_1 = arith.constant 0 : i32
    return %c0_i32, %c0_i32_0 : i32, i32
  }
  func.func @transform_7(%arg0: i32) -> (i32, i32) {
    %c0_i32 = arith.constant 0 : i32
    %c0_i32_0 = arith.constant 0 : i32
    return %c0_i32, %arg0 : i32, i32
  }
}

</mosaic_0001>

<bundles_post_ra>
// kernel: tpu_custom_call.1
= control target key start
LH: loop header
LB: loop body
LE: loop exit
PB: predicated region body
PF: predicated region fallthrough
CT: control target
= control target key end

     0   :  { %12 = vsyncpa [#allocation3], 0  ;;  %s1050_s0 = inlined_call_operand.hbm [shape: bf16[32,512], index: 0, kind: input, shape index: {}]   ;;  %s1051_s1 = inlined_call_operand.vmem [shape: bf16[8,32], index: 1, kind: input, shape index: {}]   ;;  %s1052_s2 = inlined_call_operand.vmem [shape: f32[8,1], index: 2, kind: input, shape index: {}]   ;;  %s1053_s3 = inlined_call_operand.vmem [shape: bf16[4,8], index: 3, kind: input, shape index: {}]   ;;  %s1054_s4 = inlined_call_operand.vmem [shape: f32[4,1], index: 4, kind: input, shape index: {}]   ;;  %s1055_s5 = inlined_call_operand.vmem [shape: bf16[8,4], index: 5, kind: input, shape index: {}]   ;;  %s1056_s6 = inlined_call_operand.vmem [shape: f32[8,1], index: 6, kind: input, shape index: {}]   ;;  %s1057_s7 = inlined_call_operand.hbm [shape: f32[8,512], index: 7, kind: output, shape index: {}]  }
   0x1   :  { %14 = vsyncpa [#allocation3 + $0x1], 0 }
   0x2   :  { %15 = vsyncpa [#allocation4], 0 }
   0x3   :  { %17 = vsyncpa [#allocation4 + $0x1], 0  ;;  %s869_s24 = smov 0   ;;  %s871_s25 = smov 0  }
   0x4   :  { %s873_s26 = smov 0   ;;  %s875_s27 = smov 0  }
   0x5 LB: > { %s890_s28 = sadd.s32 4294967295, %s820_s27   ;;  %s640_s29 = sadd.s32 4294967294, %s820_s27   ;;  %s820_s27 = sphi %s875_s27, %s1071_s27   ;;  %s816_s26 = sphi %s873_s26, %s1070_s26   ;;  %s812_s25 = sphi %s871_s25, %s1069_s25   ;;  %s808_s24 = sphi %s869_s24, %s1068_s24  }
   0x6   : > { %s894_s30 = sadd.s32 1, %s820_s27   ;;  %s30_s8 = sadd.s32 1, %s816_s26 }
   0x7   : > { %s27_s9 = ssub.s32 %s820_s27, %s894_s30  ;;  %p37_p0 = scmp.ne.s32.totalorder %s816_s26, %s812_s25 }
   0x8   : > { %p28_p1 = scmp.eq.s32.totalorder %s27_s9, 0  ;;  %p38_p2 = scmp.eq.s32.totalorder %s820_s27, 0 }
   0x9   : > { %p43_p3 = scmp.ne.s32.totalorder %s812_s25, %s808_s24  ;;  %p44_p4 = scmp.eq.s32.totalorder %s890_s28, 0 }
   0xa   : > { %s906_s10 = scalar_select %p28_p1, %s816_s26, %s30_s8  }
   0xb   : > { %p908_p5 = por %p38_p2, %p37_p0  ;;  %p912_p6 = por %p44_p4, %p43_p3 }
   0xc   : > { %p193_p7 = scmp.eq.s32.totalorder %s890_s28, 1  ;;  %p199_p8 = scmp.eq.s32.totalorder %s640_s29, 1 }
   0xd   : > { %p677_p10 = scmp.lt.s32.totalorder %s820_s27, 2  ;;  %s237_s15 = sand.u32 1, %s816_s26  }
   0xe   : > { %p919_p11 = por %p193_p7, %p37_p0  ;;  %p923_p12 = por %p199_p8, %p43_p3 }
   0xf   : > { %s663_s16 = sshll.u32 %s820_s27, 7  ;;  %s643_s17 = sshll.u32 %s237_s15, 5 }
  0x10   : > { %s1061_s13 = scalar_select %p919_p11, 1, 0 }
  0x11   : > { %s1062_s14 = scalar_select %p923_p12, 1, 0 }
  0x12   : > { %s932_s20 = scalar_lea.hbm %s1050_s0, %s663_s16  ;;  %s241_s21 = scalar_lea.vmem [#allocation2], %s643_s17 }
  0x13   : > { %s248_s22 = sshll.u32 %s241_s21, 4  ;;  %p936_p13 = pnand %p677_p10, %p908_p5  ;;  %s940_s22 = int_to_ptr.vmem [resolvable:$true] %s248_s22 }
  0x14   : > { %s943_s29 = scalar_lea.sflag [#allocation3], %s237_s15  ;;  %s724_s8 = scalar_lea.hbm %s932_s20, 512 }
  0x15   : > { %p725_p1 = scmp.ne.s32.totalorder %s932_s20, %s724_s8  ;;  %p726_p2 = pneg %p936_p13 }
  0x16   : > { %s729_s16 = scalar_lea.hbm %s1050_s0, 1024  ;;  %p730_p5 = scmp.lt.u32.totalorder %s932_s20, %s1050_s0 }
  0x17   : > { %p727_p3 = pnand %p726_p2, %p725_p1  ;;  %p731_p7 = scmp.lt.u32.totalorder %s729_s16, %s724_s8 }
  0x18   : > { %p733_p10 = scmp.lt.u32.totalorder %s724_s8, %s932_s20 }
  0x19   : > { %p728_p4 = pneg %p727_p3  ;;  %p732_p8 = por %p731_p7, %p730_p5 }
  0x1b   : > { %p734_p9 = por %p733_p10, %p732_p8 }
  0x1d   : > { %p735_p0 = pnand %p734_p9, %p728_p4 }
  0x1f   : > { %738 = shalt.err (!%p735_p0)
}
  0x20   : > { %s739_s15 = scalar_lea.vmem %s940_s22, 512  ;;  %s822_s19 = smov [#allocation2]  }
  0x21   : > { %p740_p1 = scmp.ne.s32.totalorder %s940_s22, %s739_s15  ;;  %s744_s21 = sshll.u32 %s822_s19, 4  ;;  %s745_s21 = int_to_ptr.vmem [resolvable:$false] %s744_s21 }
  0x22   : > { %s746_s9 = scalar_lea.vmem %s745_s21, 1024  ;;  %p747_p11 = scmp.lt.s32.totalorder %s940_s22, %s745_s21 }
  0x23   : > { %p742_p3 = pnand %p740_p1, %p726_p2  ;;  %p748_p5 = scmp.lt.s32.totalorder %s746_s9, %s739_s15 }
  0x25   : > { %p743_p12 = pneg %p742_p3  ;;  %p749_p7 = por %p748_p5, %p747_p11 }
  0x27   : > { %p750_p8 = pnand %p749_p7, %p743_p12 }
  0x29   : > { %753 = shalt.err (!%p750_p8)
}
  0x2a   : > { %s823_s8 = smov 256   ;;  %s824_s11 = smov 128  }
  0x2b   : > { %s825_s16 = smov 8   ;;  %p256_p9 = scmp.lt.s32.totalorder %s820_s27, 3 }
  0x2c   : > { %672 = dma.hbm_to_vmem [thread:$0]  (!%p936_p13), %s932_s20, 512, %s940_s22, %s943_s29, %s823_s8, %s824_s11, %s825_s16  }
  0x2d   : > { %p1064_p0 = scmp.ge.s32.totalorder %s820_s27, 1 }
  0x2f   : > { %p257_p2 = pnand %p1064_p0, %p256_p9 }
  0x30   : > { %s975_s17 = sand.u32 (!%p257_p2), 1, %s812_s25  }
  0x31   : > { %260 = sbr.rel (%p257_p2) target bundleno = 734 (0x2de), region = 48  ;;  %s647_s18 = sshll.u32 (!%p257_p2), %s975_s17, 5 }
  0x32   : > { %s263_s15 = scalar_lea.sflag (!%p257_p2), [#allocation3], %s975_s17  ;;  %s266_s19 = scalar_lea.vmem (!%p257_p2), [#allocation2], %s647_s18 }
  0x38   : > { %799 = dma.done.wait (%p912_p6), %s263_s15, 512  }
  0x39   : > { %801 = vsyncadd (%p912_p6), %s263_s15, 4294966784  ;;  %v826_v0 = vmov 0   ;;  %v718_v1 = vld [vmem:[%s266_s19 + $0x4] ss:$8 sps:$4 sm:$0xff]   ;;  %v720_v2 = vld [vmem:[%s266_s19] ss:$8 sps:$4 sm:$0xff]  }
  0x3a   : > { %367 = vmatprep.mubr.bf16.mxu0 %v826_v0  ;;  %716 = vset.pattern.permute.xlu0 %v826_v0  ;;  %v721_v3 = vld [vmem:[%s266_s19 + $0x14] ss:$8 sps:$4 sm:$0xff]   ;;  %v723_v4 = vld [vmem:[%s266_s19 + $0x10] ss:$8 sps:$4 sm:$0xff]   ;;  %v305_v5 = vld [vmem:[%s1052_s2] sm:$0xff]  ;;  %vm331_vm0 = vcmask 261120  }
  0x3b   : > { %717 = vset.pattern.permute.xlu1 %v826_v0  ;;  %335 = vmatprep.subr.bf16.mxu0 %v718_v1  ;;  %v380_v6 = vld [vmem:[%s1054_s4] sm:$0xf]  ;;  %v827_v8 = vmov 0.0   ;;  %vm386_vm1 = vcmask 64512   ;;  %vm475_vm2 = vcmask 1043456   ;;  %vm471_vm3 = vcmask 31744  }
  0x3c   : > { %336 = vmatpush1.bf16.msra.mxu0 %v720_v2  ;;  %308 = vperm.xlu0 %716, %v305_v5   ;;  %v304_v7 = vld [vmem:[%s1051_s1] sm:$0xf]  ;;  %s648_s19 = sshll.u32 %s975_s17, 4  ;;  %s664_s20 = sshll.u32 %s890_s28, 8 }
  0x3d   : > { %337 = vmatprep.subr.bf16.mxu0 %v721_v3  ;;  %454 = vmatprep.mubr.f32.mxu1 %v827_v8  ;;  %v378_v13 = vld [vmem:[%s1053_s3] sm:$0x3]  ;;  %s296_s22 = scalar_lea.vmem [#allocation5], %s648_s19  ;;  %s1006_s21 = scalar_lea.hbm %s1057_s7, %s664_s20 }
  0x3e   : > { %v379_v18 = vunpack.c.l.bf16 %v378_v13  ;;  %v465_v20 = vld [vmem:[%s1056_s6] sm:$0xff]  ;;  %s570_s23 = sshll.u32 %s296_s22, 4  ;;  %s556_s9 = scalar_lea.sflag [#allocation4], %s975_s17  ;;  %s1008_s23 = int_to_ptr.vmem [resolvable:$true] %s570_s23 }
  0x3f   : > { %468 = vperm.xlu1 %717, %v465_v20   ;;  %v463_v25 = vld [vmem:[%s1055_s5] sm:$0xf]  ;;  %s754_s28 = scalar_lea.vmem %s1008_s23, 256  ;;  %p1065_p11 = scmp.ne.s32.totalorder %s1061_s13, 0 }
  0x40   : > { %338 = vmatpush1.bf16.msra.mxu0 %v723_v4  ;;  %383 = vperm.xlu0 %716, %v380_v6   ;;  %v464_v28 = vunpack.c.l.bf16 %v463_v25  ;;  %p755_p6 = scmp.ne.s32.totalorder %s1008_s23, %s754_s28  ;;  %s828_s8 = smov [#allocation5]  }
  0x41   : > { %s758_s11 = sshll.u32 %s828_s8, 4  ;;  %s759_s11 = int_to_ptr.vmem [resolvable:$false] %s758_s11 }
  0x42   : > { %p756_p12 = pnand %p755_p6, %p1065_p11  ;;  %s760_s16 = scalar_lea.vmem %s759_s11, 512 }
  0x43   : > { %653 = vmatmul.mubr.msk.bf16.vlgmr.msra.gmra.mrb[0].mxu0 %vm331_vm0, %v304_v7  ;;  %p761_p4 = scmp.lt.s32.totalorder %s1008_s23, %s759_s11  ;;  %p762_p10 = scmp.lt.s32.totalorder %s760_s16, %s754_s28 }
  0x44   : > { %p757_p13 = pneg %p756_p12 }
  0x45   : > { %p763_p1 = por %p762_p10, %p761_p4 }
  0x47   : > { %p764_p3 = pnand %p763_p1, %p757_p13 }
  0xbb   : > { %v309_v9 = vpop.permute.xlu0 %308 }
  0xbe   : > { %v469_v30 = vpop.permute.xlu1 %468 }
  0xbf   : > { %v384_v21 = vpop.permute.xlu0 %383 }
 0x116   : > { %v369_v10 = vpop.f32.mrb[0].mxu0 }
 0x117   : > { %v370_v11 = vadd.f32 %v369_v10, %v309_v9  ;;  %v371_v12 = vpop.f32.mrb[1].mxu0 }
 0x118   : > { %v373_v14 = vpop.f32.mrb[2].mxu0  ;;  %v372_v15 = vadd.f32 %v371_v12, %v309_v9 }
 0x119   : > { %v374_v16 = vpop.f32.mrb[3].mxu0  ;;  %v376_v19 = vmax.f32 %v370_v11, 0.0 }
 0x11a   : > { %v377_v17 = vmax.f32 %v372_v15, 0.0 }
 0x11c   : > { %390 = vmatprep.subr.mxu1 %v377_v17 }
 0x11d   : > { %391 = vmatpush1.msra.mxu1 %v376_v19 }
 0x11e   : > { %654 = vmatmul.mubr.msk.f32.vlgmr.msra.gmra.mrb[0].mxu1 %vm386_vm1, %v379_v18 }
 0x11f   : > { %546 = vmatprep.mubr.f32.mxu1 %v827_v8 }
 0x1f1   : > { %v456_v22 = vpop.f32.mrb[0].mxu1 }
 0x1f2   : > { %v457_v23 = vadd.f32 %v456_v22, %v384_v21  ;;  %v458_v24 = vpop.f32.mrb[1].mxu1 }
 0x1f3   : > { %v459_v26 = vadd.f32 %v458_v24, %v384_v21 }
 0x1f4   : > { %v461_v29 = vmax.f32 %v457_v23, 0.0 }
 0x1f5   : > { %v462_v27 = vmax.f32 %v459_v26, 0.0 }
 0x1f7   : > { %655 = vmatprep.subr.msk.mxu1 %vm475_vm2, %v462_v27 }
 0x1f8   : > { %656 = vmatpush1.msk.msra.mxu1 %vm475_vm2, %v461_v29 }
 0x1f9   : > { %657 = vmatmul.mubr.msk.f32.vlgmr.msra.gmra.mrb[2].mxu1 %vm471_vm3, %v464_v28 }
 0x2cc   : > { %v548_v31 = vpop.f32.mrb[2].mxu1 }
 0x2cd   : > { %v549_v32 = vadd.f32 %v548_v31, %v469_v30  ;;  %v550_v33 = vpop.f32.mrb[3].mxu1 }
 0x2ce   : > { %v551_v34 = vadd.f32 %v550_v33, %v469_v30 }
 0x2cf   : > { %553 = vst [vmem:[%s296_s22] sm:$0xff] %v549_v32 }
 0x2d0   : > { %554 = vst [vmem:[%s296_s22 + $0x8] sm:$0xff] %v551_v34 }
 0x2d1   : > { %767 = shalt.err (!%p764_p3)
}
 0x2d2   : > { %s768_s17 = scalar_lea.hbm %s1006_s21, 256  ;;  %s772_s19 = scalar_lea.hbm %s1057_s7, 512 }
 0x2d3   : > { %p769_p5 = scmp.ne.s32.totalorder %s1006_s21, %s768_s17  ;;  %p773_p9 = scmp.lt.u32.totalorder %s1006_s21, %s1057_s7 }
 0x2d4   : > { %p774_p0 = scmp.lt.u32.totalorder %s772_s19, %s768_s17  ;;  %p776_p6 = scmp.lt.u32.totalorder %s768_s17, %s1006_s21 }
 0x2d5   : > { %p770_p7 = pnand %p769_p5, %p1065_p11 }
 0x2d6   : > { %p775_p2 = por %p774_p0, %p773_p9 }
 0x2d7   : > { %p771_p8 = pneg %p770_p7 }
 0x2d8   : > { %p777_p12 = por %p776_p6, %p775_p2 }
 0x2da   : > { %p778_p13 = pnand %p777_p12, %p771_p8 }
 0x2dc   : > { %781 = shalt.err (!%p778_p13)
}
 0x2dd   : > { %667 = dma.vmem_to_hbm [thread:$0]  (%p1065_p11), %s1008_s23, 256, %s1006_s21, %s556_s9  }
 0x2de PF: > { %s582_s29 = sand.u32 1, %s808_s24   ;;  %p1066_p4 = scmp.ne.s32.totalorder %s1062_s14, 0 }
 0x2df   : > { %p1067_p10 = scmp.ge.s32.totalorder %s820_s27, 2  ;;  %s583_s12 = scalar_lea.sflag [#allocation4], %s582_s29 }
 0x2e1   : > { %p674_p1 = pnand %p1067_p10, %p1066_p4 }
 0x2e3   : > { %803 = dma.done.wait (!%p674_p1), %s583_s12, 256  }
 0x2e4   : > { %805 = vsyncadd (!%p674_p1), %s583_s12, 4294967040  ;;  %p20_p3 = scmp.ge.s32.totalorder %s894_s30, 4   ;;  %s1068_s24 = smov %s812_s25 }
 0x2e5   : > { %s1069_s25 = smov %s816_s26  ;;  %s1070_s26 = smov %s906_s10 }
 0x2e6   : > { %s1071_s27 = smov %s894_s30  ;;  %22 = sbr.rel (!%p20_p3) target bundleno = 5 (0x5), region = 93 }
 0x2ed   :  { %588 = vsyncpa [#allocation3], 1 }
 0x2ee   :  { %590 = vsyncpa [#allocation3 + $0x1], 1 }
 0x2ef   :  { %591 = vsyncpa [#allocation4], 1 }
 0x2f0   :  { %593 = vsyncpa [#allocation4 + $0x1], 1 }

</bundles_post_ra>
